<compile_context>
chip_gen: v5e
topology: v5e:2x2
jax: 0.10.0
libtpu: 0.0.40
codegen_flags: <defaults>
</compile_context>

<pallas_src>
import functools
import math

import jax
import jax.numpy as jnp
from jax.experimental import pallas as pl
from jax.experimental.pallas import tpu as pltpu


# --------------------------------------------------------------------------------------
# pltpu.roll direction probe (cached).  The kernel needs y[n] = a[(n + delta) mod TN];
# rather than hard-coding the primitive's rotation convention, detect it once with a
# tiny kernel and pick the shift sign accordingly.
# --------------------------------------------------------------------------------------
@functools.lru_cache(maxsize=None)
def _roll_is_numpy_convention() -> bool:
    def probe(x_ref, o_ref):
        o_ref[...] = pltpu.roll(x_ref[...], 1, 1)

    x = jnp.tile(jax.lax.iota(jnp.int32, 128)[None, :], (8, 1))
    y = pl.pallas_call(probe, out_shape=jax.ShapeDtypeStruct((8, 128), jnp.int32))(x)
    # np.roll(x, +1) puts x[..., 127] at position 0.
    return int(y[0, 0]) == 127


def _pick_tile(n, w, tile_n):
    """Pick a lane-tile size: multiple of lcm(W, 128); a divisor of N when possible."""
    unit = (w * 128) // math.gcd(w, 128)
    if n % unit == 0:
        m = n // unit
        best = 1
        for c in range(1, m + 1):
            if m % c == 0 and c * unit <= max(tile_n, unit):
                best = c
        tn = best * unit
        return tn, n                      # no padding, no post-call slice copy
    tn = min(max(tile_n // unit, 1) * unit, ((n + unit - 1) // unit) * unit)
    n_pad = ((n + tn - 1) // tn) * tn
    return tn, n_pad


def _make_kernel(w_spatial, tn, roll_numpy):
    def kernel(a_ref, wk_ref, b_ref, wmod_ref, o_ref):
        # a_ref    : (49, TN) bf16  -- (kd,kh) im2col rows, w-axis unshifted
        # wk_ref   : (7, 64, 49) bf16 -- fuse-folded weights grouped by kw
        # b_ref    : (64, 1)  f32   -- fuse-folded bias
        # wmod_ref : (1, TN) int32  -- lane index mod W (identical for every tile)
        # o_ref    : (64, TN) f32 (or bf16)
        a = a_ref[...]
        wmod = wmod_ref[...]
        # center tap column (kw == 3): no shift, no mask
        acc = jnp.dot(wk_ref[3], a, preferred_element_type=jnp.float32)
        for kw in (0, 1, 2, 4, 5, 6):
            delta = kw - 3
            shift = ((-delta) if roll_numpy else delta) % tn
            shifted = pltpu.roll(a, shift, 1)          # XLU lane rotation (within tile)
            if delta > 0:
                valid = wmod < (w_spatial - delta)     # w + delta must stay < W
            else:
                valid = wmod >= (-delta)               # w + delta must stay >= 0
            masked = jnp.where(valid, shifted, jnp.zeros_like(shifted))
            acc = acc + jnp.dot(wk_ref[kw], masked, preferred_element_type=jnp.float32)
        o_ref[...] = (acc + b_ref[...]).astype(o_ref.dtype)

    return kernel


def mscs_forward(x, params, *, tile_n=8192, out_dtype=jnp.float32):
    """x: (B, 1, D, H, W) float32 (PyTorch NCDHW). Returns (B, 64, D, H, W) out_dtype."""
    B, _, D, H, W = x.shape
    N = D * H * W
    hi = jax.lax.Precision.HIGHEST

    # ---- fold the 1x1x1 fuse conv into the conv weights (exact algebra), then merge
    #      the 3^3 and 5^3 taps into the centered positions of the 7^3 tap grid. ----
    w3 = params["w3"].reshape(64, 27)
    w5 = params["w5"].reshape(64, 125)
    w7 = params["w7"].reshape(64, 343)
    wf = params["wf"].reshape(64, 192)
    f3, f5, f7 = wf[:, 0:64], wf[:, 64:128], wf[:, 128:192]

    W3 = jnp.dot(f3, w3, precision=hi).reshape(64, 3, 3, 3)
    W5 = jnp.dot(f5, w5, precision=hi).reshape(64, 5, 5, 5)
    W7 = jnp.dot(f7, w7, precision=hi).reshape(64, 7, 7, 7)
    W_all = (W7
             + jnp.pad(W5, ((0, 0), (1, 1), (1, 1), (1, 1)))
             + jnp.pad(W3, ((0, 0), (2, 2), (2, 2), (2, 2))))           # (64,7,7,7)
    # group taps by kw: Wk[kw, o, kd*7+kh] -- matches the A49 row ordering below.
    Wk = jnp.transpose(W_all, (3, 0, 1, 2)).reshape(7, 64, 49).astype(jnp.bfloat16)
    b_all = (jnp.dot(f3, params["b3"], precision=hi)
             + jnp.dot(f5, params["b5"], precision=hi)
             + jnp.dot(f7, params["b7"], precision=hi)
             + params["bf"]).reshape(64, 1).astype(jnp.float32)

    # ---- (kd,kh) im2col only (49 rows, bf16, channels-first lane-dense layout);
    #      the 7 kw taps are produced inside the kernel via lane rolls + masks. ----
    xdh = jnp.pad(x[:, 0].astype(jnp.bfloat16), ((0, 0), (3, 3), (3, 3), (0, 0)))
    cols = []
    for kd in range(7):
        for kh in range(7):
            cols.append(xdh[:, kd:kd + D, kh:kh + H, :].reshape(B, N))
    a49 = jnp.stack(cols, axis=1)                                        # (B, 49, N)

    tn, n_pad = _pick_tile(N, W, tile_n)
    if n_pad != N:
        a49 = jnp.pad(a49, ((0, 0), (0, 0), (0, n_pad - N)))
    n_tiles = n_pad // tn
    wmod = (jnp.arange(tn, dtype=jnp.int32) % W).reshape(1, tn)

    kernel = _make_kernel(W, tn, _roll_is_numpy_convention())

    grid_spec = pltpu.PrefetchScalarGridSpec(
        num_scalar_prefetch=0,
        grid=(B * n_tiles,),                 # 1-D grid -> balanced across v7x's 2 TCs
        in_specs=[
            pl.BlockSpec((None, 49, tn), lambda g: (g // n_tiles, 0, g % n_tiles)),
            pl.BlockSpec((7, 64, 49), lambda g: (0, 0, 0)),    # weights resident
            pl.BlockSpec((64, 1), lambda g: (0, 0)),           # bias resident
            pl.BlockSpec((1, tn), lambda g: (0, 0)),           # lane-mod-W resident
        ],
        out_specs=pl.BlockSpec((None, 64, tn),
                               lambda g: (g // n_tiles, 0, g % n_tiles)),
    )
    cost = pl.CostEstimate(
        flops=2 * B * n_pad * 343 * 64,
        transcendentals=0,
        bytes_accessed=(a49.size * 2 + Wk.size * 2 + b_all.size * 4 + wmod.size * 4
                        + B * 64 * n_pad * jnp.dtype(out_dtype).itemsize),
    )

    out = pl.pallas_call(
        kernel,
        out_shape=jax.ShapeDtypeStruct((B, 64, n_pad), out_dtype),
        grid_spec=grid_spec,
        compiler_params=pltpu.CompilerParams(dimension_semantics=("parallel",)),
        cost_estimate=cost,
    )(a49, Wk, b_all, wmod)

    # (B, 64, N) -> NCDHW directly (channels-first layout, no transpose).
    return out[:, :, :N].reshape(B, 64, D, H, W)


def init_params(key):
    """Deterministic PyTorch-Conv3d-style init (uniform(+/- 1/sqrt(fan_in)))."""
    ks = jax.random.split(key, 8)

    def conv_init(kw, kb, shape):
        fan_in = shape[1] * shape[2] * shape[3] * shape[4]
        bound = 1.0 / math.sqrt(fan_in)
        w = jax.random.uniform(kw, shape, jnp.float32, -bound, bound)
        b = jax.random.uniform(kb, (shape[0],), jnp.float32, -bound, bound)
        return w, b

    w3, b3 = conv_init(ks[0], ks[1], (64, 1, 3, 3, 3))
    w5, b5 = conv_init(ks[2], ks[3], (64, 1, 5, 5, 5))
    w7, b7 = conv_init(ks[4], ks[5], (64, 1, 7, 7, 7))
    wf, bf = conv_init(ks[6], ks[7], (64, 192, 1, 1, 1))
    return dict(w3=w3, b3=b3, w5=w5, b5=b5, w7=w7, b7=b7, wf=wf, bf=bf)


def mscs_reference(x, params):
    """Pure-JAX reference (lax.conv) matching the PyTorch MSCS forward."""
    hi = jax.lax.Precision.HIGHEST

    def conv(inp, w, b, pad):
        y = jax.lax.conv_general_dilated(
            inp, w, window_strides=(1, 1, 1),
            padding=[(pad, pad)] * 3,
            dimension_numbers=("NCDHW", "OIDHW", "NCDHW"),
            precision=hi)
        return y + b[None, :, None, None, None]

    x1 = conv(x, params["w3"], params["b3"], 1)
    x2 = conv(x, params["w5"], params["b5"], 2)
    x3 = conv(x, params["w7"], params["b7"], 3)
    cat = jnp.concatenate([x1, x2, x3], axis=1)
    return conv(cat, params["wf"], params["bf"], 0)


if __name__ == "__main__":
    key = jax.random.PRNGKey(0)
    kx, kp = jax.random.split(key)

    B, D, H, W = 2, 8, 8, 8
    x = jax.random.normal(kx, (B, 1, D, H, W), jnp.float32)
    params = init_params(kp)

    out = jax.block_until_ready(mscs_forward(x, params))
    assert out.shape == (B, 64, D, H, W), out.shape

    ref = jax.block_until_ready(mscs_reference(x, params))
    max_err = float(jnp.max(jnp.abs(out - ref)))
    if max_err > 2e-2:
        raise AssertionError(f"mismatch vs reference, max abs err = {max_err}")

    print("KERNEL_OK")
</pallas_src>

<mosaic_0001>
module attributes {stable_mosaic.version = 11 : i64} {
  func.func @probe(%arg0: memref<8x128xi32, #tpu.memory_space<vmem>>, %arg1: memref<8x128xi32, #tpu.memory_space<vmem>>) attributes {dimension_semantics = [], scalar_prefetch = 0 : i64, scratch_operands = 0 : i64, tpu.core_type = #tpu.core_type<tc>} {
    %c0 = arith.constant 0 : index
    %c0_0 = arith.constant 0 : index
    %0 = vector.load %arg0[%c0, %c0_0] : memref<8x128xi32, #tpu.memory_space<vmem>>, vector<8x128xi32>
    %c1_i32 = arith.constant 1 : i32
    %1 = tpu.dynamic_rotate %0 by %c1_i32 dim 1 : vector<8x128xi32>, i32 -> vector<8x128xi32>
    %c0_1 = arith.constant 0 : index
    %c0_2 = arith.constant 0 : index
    %2 = vector.load %arg1[%c0_1, %c0_2] : memref<8x128xi32, #tpu.memory_space<vmem>>, vector<8x128xi32>
    tpu.vector_store %arg1[%c0_1, %c0_2], %1 {strides = array<i32>} : memref<8x128xi32, #tpu.memory_space<vmem>>, vector<8x128xi32>,
    return
  }
}

</mosaic_0001>

<bundles_post_ra>
// kernel: tpu_custom_call.1
= control target key start
LH: loop header
LB: loop body
LE: loop exit
PB: predicated region body
PF: predicated region fallthrough
CT: control target
= control target key end

     0   :  { %6 = vsyncpa [#allocation3], 0  ;;  %s118_s0 = inlined_call_operand.hbm [shape: s32[8,128], index: 0, kind: input, shape index: {}]   ;;  %s119_s1 = inlined_call_operand.hbm [shape: s32[8,128], index: 1, kind: output, shape index: {}]  }
   0x1   :  { %7 = vsyncpa [#allocation4], 0  ;;  %s13_s8 = sshll.u32 %s118_s0, 4  ;;  %s99_s9 = smov [#allocation2]   ;;  %s14_s8 = int_to_ptr.hbm [resolvable:$true] %s13_s8 }
   0x2   :  { %s15_s10 = sshll.u32 %s99_s9, 4  ;;  %s16_s10 = int_to_ptr.vmem [resolvable:$true] %s15_s10 }
   0x3   :  { %18 = dma.hbm_to_vmem [thread:$0]  %s14_s8, 128, %s16_s10, [#allocation3]  }
   0x4   :  { %95 = dma.done.wait [#allocation3], 128  }
   0x5   :  { %96 = vsyncadd [#allocation3], 4294967168  ;;  %v23_v0 = vld [vmem:[#allocation2] sm:$0xff]  ;;  %s100_s11 = smov 1   ;;  %s101_s12 = smov [#allocation5]  }
   0x6   :  { %24 = vrot.lane.b32.xlu0 %v23_v0, %s100_s11  ;;  %s32_s13 = sshll.u32 %s101_s12, 4  ;;  %s34_s16 = sshll.u32 %s119_s1, 4  ;;  %s33_s13 = int_to_ptr.vmem [resolvable:$true] %s32_s13  ;;  %s35_s16 = int_to_ptr.hbm [resolvable:$true] %s34_s16 }
  0x78   :  { %v25_v1 = vpop.permute.xlu0 %24 }
  0x79   :  { %26 = vst [vmem:[#allocation5] sm:$0xff] %v25_v1 }
  0x7a   :  { %37 = dma.vmem_to_hbm [thread:$0]  %s33_s13, 128, %s35_s16, [#allocation4]  }
  0x7b   :  { %97 = dma.done.wait [#allocation4], 128  }
  0x7c   :  { %98 = vsyncadd [#allocation4], 4294967168 }
  0x7d   :  { %42 = vsyncpa [#allocation3], 1 }
  0x7e   :  { %43 = vsyncpa [#allocation4], 1 }

</bundles_post_ra>
